<compile_context>
chip_gen: v7x
topology: tpu7x:2x2x1
jax: 0.10.0
libtpu: 0.0.40
codegen_flags: <defaults>
</compile_context>

<pallas_src>
import jax
import jax.numpy as jnp
from jax.experimental import pallas as pl
from jax.experimental.pallas import tpu as pltpu

# ---------------------------------------------------------------------------
# Model hyperparameters (kept small; consistent with the module's forward)
# ---------------------------------------------------------------------------
INPUT_SIZE = 5            # [cos_phase, sin_phase, speed, incline, is_stairs]
NUM_PRED_FEATURES = 6     # kinematics vector (foot/shank angles+vels, heel accels)
DIM_VAL = 128             # latent dim (module default 512; kept small + MXU aligned)
OUT_PAD = 8               # output padded 6 -> 8 cols; last dim == full array dim
MIN_TILE = 256            # batch-tile alignment once the grid has >= 2 steps
MAX_BATCH_TILE = 2048     # per-tile VMEM cost ~ tile * 1.7 KiB -> ~3.5 MiB at 2048


def _gelu_exact(x):
    # PyTorch nn.GELU() default = exact erf-based GELU, computed in f32.
    return 0.5 * x * (1.0 + jax.lax.erf(x * jnp.float32(0.7071067811865476)))


def gait_mlp_kernel(x_ref,
                    w_emb_ref, b_emb_ref,
                    w_h0_ref, b_h0_ref,
                    w_h1_ref, b_h1_ref,
                    w_out_ref, b_out_ref,
                    o_ref):
    """Whole MLP forward for one batch tile, fused in VMEM.

    Weights are bf16 [in, out]; biases f32 [1, out]; all dots accumulate in f32.
    """
    x = x_ref[...]                                        # f32 [tile, 5]

    def dense(h_f32, w_ref, b_ref):
        acc = jnp.dot(h_f32.astype(jnp.bfloat16), w_ref[...],
                      preferred_element_type=jnp.float32)
        return acc + b_ref[...]

    h = dense(x, w_emb_ref, b_emb_ref)                    # embedding (no activation)
    h = _gelu_exact(dense(h, w_h0_ref, b_h0_ref))         # hidden layer 0
    h = _gelu_exact(dense(h, w_h1_ref, b_h1_ref))         # hidden layer 1
    out = dense(h, w_out_ref, b_out_ref)                  # output (6 cols padded to 8)
    o_ref[...] = out.astype(o_ref.dtype)


def _round_up(n, m):
    return ((n + m - 1) // m) * m


def pack_params(params):
    """One-time packing (call once, outside the per-step jitted forward):
    bf16 matmul operands; output layer zero-padded from 6 to 8 columns."""
    w_emb, b_emb, w_h0, b_h0, w_h1, b_h1, w_out, b_out = params
    w_out_p = (jnp.zeros((DIM_VAL, OUT_PAD), jnp.float32)
               .at[:, :NUM_PRED_FEATURES].set(w_out)).astype(jnp.bfloat16)
    b_out_p = jnp.zeros((1, OUT_PAD), jnp.float32).at[:, :NUM_PRED_FEATURES].set(b_out)
    return (w_emb.astype(jnp.bfloat16), b_emb,
            w_h0.astype(jnp.bfloat16), b_h0,
            w_h1.astype(jnp.bfloat16), b_h1,
            w_out_p, b_out_p)


@jax.jit
def gait_model_forward(x, packed_params):
    """x: [B, INPUT_SIZE] f32, packed_params from pack_params()
    -> [B, NUM_PRED_FEATURES] f32."""
    B, in_dim = x.shape
    assert in_dim == INPUT_SIZE
    (w_emb_k, b_emb, w_h0_k, b_h0, w_h1_k, b_h1, w_out_k, b_out_k) = packed_params

    # ---- batch tiling ---------------------------------------------------
    # Small batches: a single grid step (no pipeline-overhead slivers).
    # Larger batches: >= 2 tiles so v7x's second TensorCore gets work
    # (grid axis is "parallel"), tiles 256-aligned and capped at 2048 rows.
    pb = _round_up(B, 8)                         # sublane alignment
    if pb <= 2 * MIN_TILE:
        tile = pb
    else:
        tile = min(MAX_BATCH_TILE,
                   max(MIN_TILE, _round_up(-(-pb // 2), MIN_TILE)))
    pb = _round_up(pb, tile)
    xp = x if pb == B else jnp.pad(x, ((0, pb - B), (0, 0)))
    grid = (pb // tile,)

    def rep(shape):
        # grid-invariant operand (weights / biases): always block (0, 0)
        return pl.BlockSpec(shape, lambda i: (0, 0))

    out_padded = pl.pallas_call(
        gait_mlp_kernel,
        out_shape=jax.ShapeDtypeStruct((pb, OUT_PAD), jnp.float32),
        grid=grid,
        in_specs=[
            pl.BlockSpec((tile, INPUT_SIZE), lambda i: (i, 0)),       # x tile
            rep((INPUT_SIZE, DIM_VAL)), rep((1, DIM_VAL)),            # embedding
            rep((DIM_VAL, DIM_VAL)),    rep((1, DIM_VAL)),            # hidden 0
            rep((DIM_VAL, DIM_VAL)),    rep((1, DIM_VAL)),            # hidden 1
            rep((DIM_VAL, OUT_PAD)),    rep((1, OUT_PAD)),            # output (6->8)
        ],
        out_specs=pl.BlockSpec((tile, OUT_PAD), lambda i: (i, 0)),
        compiler_params=pltpu.CompilerParams(
            dimension_semantics=("parallel",),
            vmem_limit_bytes=32 * 1024 * 1024),
    )(xp, w_emb_k, b_emb, w_h0_k, b_h0, w_h1_k, b_h1, w_out_k, b_out_k)

    return out_padded[:B, :NUM_PRED_FEATURES]


def init_params(key):
    """Deterministic synthetic params (PyTorch-Linear-like uniform init).

    Weights are returned already transposed to [in, out]; biases as [1, out], all f32.
    """
    keys = jax.random.split(key, 8)

    def linear(kw, kb, fan_in, fan_out):
        bound = 1.0 / jnp.sqrt(fan_in)
        w = jax.random.uniform(kw, (fan_in, fan_out), jnp.float32, -bound, bound)
        b = jax.random.uniform(kb, (1, fan_out), jnp.float32, -bound, bound)
        return w, b

    w_emb, b_emb = linear(keys[0], keys[1], INPUT_SIZE, DIM_VAL)
    w_h0, b_h0 = linear(keys[2], keys[3], DIM_VAL, DIM_VAL)
    w_h1, b_h1 = linear(keys[4], keys[5], DIM_VAL, DIM_VAL)
    w_out, b_out = linear(keys[6], keys[7], DIM_VAL, NUM_PRED_FEATURES)
    return (w_emb, b_emb, w_h0, b_h0, w_h1, b_h1, w_out, b_out)


def reference_forward(x, params):
    """Pure-JAX reference with the same numerics as the kernel
    (bf16 matmul operands, f32 accumulation, f32 bias + exact erf-GELU)."""
    w_emb, b_emb, w_h0, b_h0, w_h1, b_h1, w_out, b_out = params

    def dot_bf16(a, w):
        return jnp.dot(a.astype(jnp.bfloat16), w.astype(jnp.bfloat16),
                       preferred_element_type=jnp.float32)

    h = dot_bf16(x, w_emb) + b_emb
    h = _gelu_exact(dot_bf16(h, w_h0) + b_h0)
    h = _gelu_exact(dot_bf16(h, w_h1) + b_h1)
    return dot_bf16(h, w_out) + b_out


if __name__ == "__main__":
    key = jax.random.PRNGKey(0)
    k_params, k_x1, k_x2 = jax.random.split(key, 3)

    params = init_params(k_params)
    packed = pack_params(params)       # one-time packing, outside the jitted forward

    # Small batch: whole batch handled in a single grid step.
    x_small = jax.random.normal(k_x1, (8, INPUT_SIZE), dtype=jnp.float32)
    out_small = jax.block_until_ready(gait_model_forward(x_small, packed))
    ref_small = reference_forward(x_small, params)
    assert out_small.shape == (8, NUM_PRED_FEATURES)
    assert jnp.allclose(out_small, ref_small, atol=1e-3, rtol=1e-3)

    # Larger ragged batch: exercises batch padding + the >=2-tile "parallel" grid
    # (tile = 512, grid = 2 here) so v7x's second TensorCore gets work.
    x_big = jax.random.normal(k_x2, (1000, INPUT_SIZE), dtype=jnp.float32)
    out_big = jax.block_until_ready(gait_model_forward(x_big, packed))
    ref_big = reference_forward(x_big, params)
    assert out_big.shape == (1000, NUM_PRED_FEATURES)
    assert jnp.allclose(out_big, ref_big, atol=1e-3, rtol=1e-3)

    print("KERNEL_OK")
</pallas_src>

<mosaic_0001>
module attributes {stable_mosaic.version = 11 : i64} {
  func.func @gait_mlp_kernel(%arg0: i32, %arg1: memref<8x5xf32, #tpu.memory_space<vmem>>, %arg2: memref<5x128xbf16, #tpu.memory_space<vmem>>, %arg3: memref<1x128xf32, #tpu.memory_space<vmem>>, %arg4: memref<128x128xbf16, #tpu.memory_space<vmem>>, %arg5: memref<1x128xf32, #tpu.memory_space<vmem>>, %arg6: memref<128x128xbf16, #tpu.memory_space<vmem>>, %arg7: memref<1x128xf32, #tpu.memory_space<vmem>>, %arg8: memref<128x8xbf16, #tpu.memory_space<vmem>>, %arg9: memref<1x8xf32, #tpu.memory_space<vmem>>, %arg10: memref<8x8xf32, #tpu.memory_space<vmem>>) attributes {dimension_semantics = [#tpu.dimension_semantics<parallel>], iteration_bounds = array<i64: 1>, scalar_prefetch = 0 : i64, scratch_operands = 0 : i64, tpu.core_type = #tpu.core_type<tc>, window_params = [{transform_indices = @transform_0, window_bounds = array<i64: 8, 5>}, {pipeline_mode = #tpu.pipeline_mode<synchronous>, transform_indices = @transform_1, window_bounds = array<i64: 5, 128>}, {pipeline_mode = #tpu.pipeline_mode<synchronous>, transform_indices = @transform_2, window_bounds = array<i64: 1, 128>}, {pipeline_mode = #tpu.pipeline_mode<synchronous>, transform_indices = @transform_3, window_bounds = array<i64: 128, 128>}, {pipeline_mode = #tpu.pipeline_mode<synchronous>, transform_indices = @transform_4, window_bounds = array<i64: 1, 128>}, {pipeline_mode = #tpu.pipeline_mode<synchronous>, transform_indices = @transform_5, window_bounds = array<i64: 128, 128>}, {pipeline_mode = #tpu.pipeline_mode<synchronous>, transform_indices = @transform_6, window_bounds = array<i64: 1, 128>}, {pipeline_mode = #tpu.pipeline_mode<synchronous>, transform_indices = @transform_7, window_bounds = array<i64: 128, 8>}, {pipeline_mode = #tpu.pipeline_mode<synchronous>, transform_indices = @transform_8, window_bounds = array<i64: 1, 8>}, {transform_indices = @transform_9, window_bounds = array<i64: 8, 8>}]} {
    %c0 = arith.constant 0 : index
    %c0_0 = arith.constant 0 : index
    %0 = vector.load %arg1[%c0, %c0_0] : memref<8x5xf32, #tpu.memory_space<vmem>>, vector<8x5xf32>
    %1 = arith.truncf %0 : vector<8x5xf32> to vector<8x5xbf16>
    %c0_1 = arith.constant 0 : index
    %c0_2 = arith.constant 0 : index
    %2 = vector.load %arg2[%c0_1, %c0_2] : memref<5x128xbf16, #tpu.memory_space<vmem>>, vector<5x128xbf16>
    %cst = arith.constant dense<0.000000e+00> : vector<8x128xf32>
    %3 = tpu.matmul %1, %2, %cst {dimension_numbers = #tpu.dot_dimension_numbers<[1], [0], [0], [1], [0, 0, 1, 1], [], []>} : vector<8x5xbf16>, vector<5x128xbf16>, vector<8x128xf32> -> vector<8x128xf32>
    %c0_3 = arith.constant 0 : index
    %c0_4 = arith.constant 0 : index
    %4 = vector.load %arg3[%c0_3, %c0_4] : memref<1x128xf32, #tpu.memory_space<vmem>>, vector<1x128xf32>
    %5 = vector.broadcast %4 : vector<1x128xf32> to vector<8x128xf32>
    %6 = arith.addf %3, %5 : vector<8x128xf32>
    %7 = arith.truncf %6 : vector<8x128xf32> to vector<8x128xbf16>
    %c0_5 = arith.constant 0 : index
    %c0_6 = arith.constant 0 : index
    %8 = vector.load %arg4[%c0_5, %c0_6] : memref<128x128xbf16, #tpu.memory_space<vmem>>, vector<128x128xbf16>
    %cst_7 = arith.constant dense<0.000000e+00> : vector<8x128xf32>
    %9 = tpu.matmul %7, %8, %cst_7 {dimension_numbers = #tpu.dot_dimension_numbers<[1], [0], [0], [1], [0, 0, 1, 1], [], []>} : vector<8x128xbf16>, vector<128x128xbf16>, vector<8x128xf32> -> vector<8x128xf32>
    %c0_8 = arith.constant 0 : index
    %c0_9 = arith.constant 0 : index
    %10 = vector.load %arg5[%c0_8, %c0_9] : memref<1x128xf32, #tpu.memory_space<vmem>>, vector<1x128xf32>
    %11 = vector.broadcast %10 : vector<1x128xf32> to vector<8x128xf32>
    %12 = arith.addf %9, %11 : vector<8x128xf32>
    %cst_10 = arith.constant 5.000000e-01 : f32
    %13 = vector.broadcast %cst_10 : f32 to vector<8x128xf32>
    %14 = arith.mulf %13, %12 : vector<8x128xf32>
    %cst_11 = arith.constant 0.707106769 : f32
    %15 = vector.broadcast %cst_11 : f32 to vector<8x128xf32>
    %16 = arith.mulf %12, %15 : vector<8x128xf32>
    %17 = math.erf %16 : vector<8x128xf32>
    %cst_12 = arith.constant 1.000000e+00 : f32
    %18 = vector.broadcast %cst_12 : f32 to vector<8x128xf32>
    %19 = arith.addf %18, %17 : vector<8x128xf32>
    %20 = arith.mulf %14, %19 : vector<8x128xf32>
    %21 = arith.truncf %20 : vector<8x128xf32> to vector<8x128xbf16>
    %c0_13 = arith.constant 0 : index
    %c0_14 = arith.constant 0 : index
    %22 = vector.load %arg6[%c0_13, %c0_14] : memref<128x128xbf16, #tpu.memory_space<vmem>>, vector<128x128xbf16>
    %cst_15 = arith.constant dense<0.000000e+00> : vector<8x128xf32>
    %23 = tpu.matmul %21, %22, %cst_15 {dimension_numbers = #tpu.dot_dimension_numbers<[1], [0], [0], [1], [0, 0, 1, 1], [], []>} : vector<8x128xbf16>, vector<128x128xbf16>, vector<8x128xf32> -> vector<8x128xf32>
    %c0_16 = arith.constant 0 : index
    %c0_17 = arith.constant 0 : index
    %24 = vector.load %arg7[%c0_16, %c0_17] : memref<1x128xf32, #tpu.memory_space<vmem>>, vector<1x128xf32>
    %25 = vector.broadcast %24 : vector<1x128xf32> to vector<8x128xf32>
    %26 = arith.addf %23, %25 : vector<8x128xf32>
    %cst_18 = arith.constant 5.000000e-01 : f32
    %27 = vector.broadcast %cst_18 : f32 to vector<8x128xf32>
    %28 = arith.mulf %27, %26 : vector<8x128xf32>
    %cst_19 = arith.constant 0.707106769 : f32
    %29 = vector.broadcast %cst_19 : f32 to vector<8x128xf32>
    %30 = arith.mulf %26, %29 : vector<8x128xf32>
    %31 = math.erf %30 : vector<8x128xf32>
    %cst_20 = arith.constant 1.000000e+00 : f32
    %32 = vector.broadcast %cst_20 : f32 to vector<8x128xf32>
    %33 = arith.addf %32, %31 : vector<8x128xf32>
    %34 = arith.mulf %28, %33 : vector<8x128xf32>
    %35 = arith.truncf %34 : vector<8x128xf32> to vector<8x128xbf16>
    %c0_21 = arith.constant 0 : index
    %c0_22 = arith.constant 0 : index
    %36 = vector.load %arg8[%c0_21, %c0_22] : memref<128x8xbf16, #tpu.memory_space<vmem>>, vector<128x8xbf16>
    %cst_23 = arith.constant dense<0.000000e+00> : vector<8x8xf32>
    %37 = tpu.matmul %35, %36, %cst_23 {dimension_numbers = #tpu.dot_dimension_numbers<[1], [0], [0], [1], [0, 0, 1, 1], [], []>} : vector<8x128xbf16>, vector<128x8xbf16>, vector<8x8xf32> -> vector<8x8xf32>
    %c0_24 = arith.constant 0 : index
    %c0_25 = arith.constant 0 : index
    %38 = vector.load %arg9[%c0_24, %c0_25] : memref<1x8xf32, #tpu.memory_space<vmem>>, vector<1x8xf32>
    %39 = vector.broadcast %38 : vector<1x8xf32> to vector<8x8xf32>
    %40 = arith.addf %37, %39 : vector<8x8xf32>
    %c0_26 = arith.constant 0 : index
    %c0_27 = arith.constant 0 : index
    %41 = vector.load %arg10[%c0_26, %c0_27] : memref<8x8xf32, #tpu.memory_space<vmem>>, vector<8x8xf32>
    tpu.vector_store %arg10[%c0_26, %c0_27], %40 {strides = array<i32>} : memref<8x8xf32, #tpu.memory_space<vmem>>, vector<8x8xf32>,
    return
  }
  func.func @transform_0(%arg0: i32) -> (i32, i32) {
    %c0_i32 = arith.constant 0 : i32
    %c0_i32_0 = arith.constant 0 : i32
    return %arg0, %c0_i32 : i32, i32
  }
  func.func @transform_1(%arg0: i32) -> (i32, i32) {
    %c0_i32 = arith.constant 0 : i32
    %c0_i32_0 = arith.constant 0 : i32
    %c0_i32_1 = arith.constant 0 : i32
    return %c0_i32, %c0_i32_0 : i32, i32
  }
  func.func @transform_2(%arg0: i32) -> (i32, i32) {
    %c0_i32 = arith.constant 0 : i32
    %c0_i32_0 = arith.constant 0 : i32
    %c0_i32_1 = arith.constant 0 : i32
    return %c0_i32, %c0_i32_0 : i32, i32
  }
  func.func @transform_3(%arg0: i32) -> (i32, i32) {
    %c0_i32 = arith.constant 0 : i32
    %c0_i32_0 = arith.constant 0 : i32
    %c0_i32_1 = arith.constant 0 : i32
    return %c0_i32, %c0_i32_0 : i32, i32
  }
  func.func @transform_4(%arg0: i32) -> (i32, i32) {
    %c0_i32 = arith.constant 0 : i32
    %c0_i32_0 = arith.constant 0 : i32
    %c0_i32_1 = arith.constant 0 : i32
    return %c0_i32, %c0_i32_0 : i32, i32
  }
  func.func @transform_5(%arg0: i32) -> (i32, i32) {
    %c0_i32 = arith.constant 0 : i32
    %c0_i32_0 = arith.constant 0 : i32
    %c0_i32_1 = arith.constant 0 : i32
    return %c0_i32, %c0_i32_0 : i32, i32
  }
  func.func @transform_6(%arg0: i32) -> (i32, i32) {
    %c0_i32 = arith.constant 0 : i32
    %c0_i32_0 = arith.constant 0 : i32
    %c0_i32_1 = arith.constant 0 : i32
    return %c0_i32, %c0_i32_0 : i32, i32
  }
  func.func @transform_7(%arg0: i32) -> (i32, i32) {
    %c0_i32 = arith.constant 0 : i32
    %c0_i32_0 = arith.constant 0 : i32
    %c0_i32_1 = arith.constant 0 : i32
    return %c0_i32, %c0_i32_0 : i32, i32
  }
  func.func @transform_8(%arg0: i32) -> (i32, i32) {
    %c0_i32 = arith.constant 0 : i32
    %c0_i32_0 = arith.constant 0 : i32
    %c0_i32_1 = arith.constant 0 : i32
    return %c0_i32, %c0_i32_0 : i32, i32
  }
  func.func @transform_9(%arg0: i32) -> (i32, i32) {
    %c0_i32 = arith.constant 0 : i32
    %c0_i32_0 = arith.constant 0 : i32
    return %arg0, %c0_i32 : i32, i32
  }
}

</mosaic_0001>

<bundles_post_ra>
// kernel: gait_model_forward.1
= control target key start
LH: loop header
LB: loop body
LE: loop exit
PB: predicated region body
PF: predicated region fallthrough
CT: control target
= control target key end

     0   :  { %14 = vsyncpa [#allocation3], 0  ;;  %s859_s0 = inlined_call_operand.vmem [shape: f32[8,5], index: 0, kind: input, shape index: {}]   ;;  %s860_s1 = inlined_call_operand.vmem [shape: bf16[5,128], index: 1, kind: input, shape index: {}]   ;;  %s861_s2 = inlined_call_operand.vmem [shape: f32[1,128], index: 2, kind: input, shape index: {}]   ;;  %s862_s3 = inlined_call_operand.vmem [shape: bf16[128,128], index: 3, kind: input, shape index: {}]   ;;  %s863_s4 = inlined_call_operand.vmem [shape: f32[1,128], index: 4, kind: input, shape index: {}]   ;;  %s864_s5 = inlined_call_operand.hbm [shape: bf16[128,128], index: 5, kind: input, shape index: {}]   ;;  %s865_s6 = inlined_call_operand.vmem [shape: f32[1,128], index: 6, kind: input, shape index: {}]   ;;  %s866_s7 = inlined_call_operand.vmem [shape: bf16[128,8], index: 7, kind: input, shape index: {}]   ;;  %s867_s8 = inlined_call_operand.vmem [shape: f32[1,8], index: 8, kind: input, shape index: {}]   ;;  %s868_s9 = inlined_call_operand.hbm [shape: f32[8,8], index: 9, kind: output, shape index: {}]  }
   0x1   :  { %15 = vsyncpa [#allocation4], 0  ;;  %s679_s30 = smov [#allocation2]   ;;  %s631_s13 = scalar_lea.hbm %s864_s5, 1024 }
   0x2   :  { %s31_s10 = sshll.u32 %s679_s30, 4  ;;  %p632_p0 = scmp.ne.s32.totalorder %s864_s5, %s631_s13  ;;  %s32_s10 = int_to_ptr.vmem [resolvable:$true] %s31_s10 }
   0x3   :  { %p635_p1 = scmp.lt.u32.totalorder %s631_s13, %s864_s5 }
   0x5   :  { %p637_p2 = pnand %p635_p1, %p632_p0 }
   0x7   :  { %640 = shalt.err (!%p637_p2)
}
   0x8   :  { %s641_s18 = scalar_lea.vmem %s32_s10, 1024  ;;  %p646_p4 = scmp.lt.s32.totalorder %s32_s10, %s32_s10 }
   0x9   :  { %p642_p3 = scmp.ne.s32.totalorder %s32_s10, %s641_s18  ;;  %p647_p5 = scmp.lt.s32.totalorder %s641_s18, %s641_s18 }
   0xb   :  { %p648_p6 = por %p647_p5, %p646_p4 }
   0xd   :  { %p649_p7 = pnand %p648_p6, %p642_p3 }
   0xf   :  { %652 = shalt.err (!%p649_p7)
}
  0x10   :  { %s680_s19 = smov 64   ;;  %s681_s20 = smov 4  }
  0x11   :  { %37 = dma.hbm_to_vmem [thread:$0]  %s864_s5, 1024, %s32_s10, [#allocation3], %s680_s19, %s680_s19, %s681_s20  }
  0x12   :  { %675 = dma.done.wait [#allocation3], 1024  }
  0x13   :  { %676 = vsyncadd [#allocation3], 4294966272  ;;  %vm62_vm0 = vcmask 1041408   ;;  %v682_v0 = vmov 0.0   ;;  %vm63_vm1 = vcmask 1042432   ;;  %v683_v1 = vmov 65535  }
  0x14   :  { %530 = vmatprep.subr.bf16.mxu0 %v682_v0  ;;  %536 = vmatprep.subr.bf16.mxu1 %v682_v0  ;;  %v64_v2 = vsel %vm62_vm0, 4294967295, %v683_v1  ;;  %vm684_vm2 = vmmov 0   ;;  %v50_v4 = vld [vmem:[%s860_s1] sm:$0x7]  ;;  %vm58_vm3 = vcmask 39936   ;;  %v604_v9 = vld [vmem:[%s862_s3 + $0x8] sm:$0xff]  }
  0x15   :  { %532 = vmatprep.mubr.msk.bf16.mxu0 %vm684_vm2, %v682_v0  ;;  %552 = vmatprep.mubr.msk.bf16.mxu1 %vm684_vm2, %v682_v0  ;;  %v65_v3 = vsel %vm63_vm1, %v64_v2, 0  ;;  %v48_v5 = vld [vmem:[%s859_s0] sm:$0xff]  ;;  %v605_v10 = vld [vmem:[%s862_s3 + $0x10] sm:$0xff]   ;;  %v606_v11 = vld [vmem:[%s862_s3 + $0x18] sm:$0xff]   ;;  %s685_s15 = smov [#allocation5]   ;;  %vm455_vm4 = vcmask 64512  }
  0x16   :  { %v67_v6 = vand.u32 %v65_v3, %v50_v4  ;;  %v603_v7 = vld [vmem:[%s862_s3] sm:$0xff]   ;;  %v49_v8 = vpack.c.bf16 %v48_v5, %v48_v5  ;;  %v608_v13 = vld [vmem:[%s862_s3 + $0x28] sm:$0xff]   ;;  %v609_v14 = vld [vmem:[%s862_s3 + $0x30] sm:$0xff]   ;;  %s463_s16 = sshll.u32 %s685_s15, 4  ;;  %s464_s16 = int_to_ptr.vmem [resolvable:$true] %s463_s16 }
  0x17   :  { %537 = vmatpush3.bf16.msra.mxu1 %v603_v7  ;;  %v607_v12 = vld [vmem:[%s862_s3 + $0x20] sm:$0xff]   ;;  %v610_v15 = vld [vmem:[%s862_s3 + $0x38] sm:$0xff]   ;;  %v612_v17 = vld [vmem:[#allocation2 + $0x8] sm:$0xff]   ;;  %p658_p9 = scmp.lt.s32.totalorder %s464_s16, %s464_s16 }
  0x18   :  { %531 = vmatpush3.bf16.msra.mxu0 %v67_v6  ;;  %538 = vmatprep.subr.bf16.mxu1 %v682_v0  ;;  %v611_v16 = vld [vmem:[#allocation2] sm:$0xff]   ;;  %v613_v18 = vld [vmem:[#allocation2 + $0x10] sm:$0xff]   ;;  %v614_v26 = vld [vmem:[#allocation2 + $0x18] sm:$0xff]  }
  0x19   :  { %556 = vmatprep.subr.bf16.mxu0 %v682_v0  ;;  %v472_v19 = vld [vmem:[%s861_s2] ss:$0 sm:$0xff]  ;;  %v616_v28 = vld [vmem:[#allocation2 + $0x28] sm:$0xff]   ;;  %v617_v29 = vld [vmem:[#allocation2 + $0x30] sm:$0xff]  }
  0x1a   :  { %v615_v27 = vld [vmem:[#allocation2 + $0x20] sm:$0xff]   ;;  %v618_v30 = vld [vmem:[#allocation2 + $0x38] sm:$0xff]   ;;  %v620_v32 = vld [vmem:[%s866_s7 + $0x8] sm:$0xff]  }
  0x1b   :  { %533 = vmatmul.mubr.msk.bf16.vlgmr.msra.gmra.mrb[0].mxu0 %vm58_vm3, %v49_v8  ;;  %539 = vmatpush3.bf16.msra.mxu1 %v604_v9  ;;  %v619_v31 = vld [vmem:[%s866_s7] sm:$0xff]   ;;  %v621_v33 = vld [vmem:[%s866_s7 + $0x10] sm:$0xff]   ;;  %v622_v46 = vld [vmem:[%s866_s7 + $0x18] sm:$0xff]  }
  0x1c   :  { %572 = vmatprep.mubr.msk.bf16.mxu0 %vm684_vm2, %v682_v0  ;;  %540 = vmatprep.subr.bf16.mxu1 %v682_v0  ;;  %v474_v34 = vld [vmem:[%s863_s4] ss:$0 sm:$0xff]  ;;  %v624_v48 = vld [vmem:[%s866_s7 + $0x28] sm:$0xff]   ;;  %v625_v49 = vld [vmem:[%s866_s7 + $0x30] sm:$0xff]  }
  0x1d   :  { %557 = vmatpush3.bf16.msra.mxu0 %v611_v16  ;;  %v623_v47 = vld [vmem:[%s866_s7 + $0x20] sm:$0xff]   ;;  %v626_v50 = vld [vmem:[%s866_s7 + $0x38] sm:$0xff]  }
  0x1e   :  { %558 = vmatprep.subr.bf16.mxu0 %v682_v0  ;;  %v483_v51 = vld [vmem:[%s865_s6] ss:$0 sm:$0xff]  ;;  %s653_s6 = scalar_lea.vmem %s464_s16, 128 }
  0x1f   :  { %541 = vmatpush3.bf16.msra.mxu1 %v605_v10  ;;  %v492_v63 = vld [vmem:[%s867_s8] ss:$0 sm:$0xff]  ;;  %p654_p8 = scmp.ne.s32.totalorder %s464_s16, %s653_s6  ;;  %p659_p10 = scmp.lt.s32.totalorder %s653_s6, %s653_s6 }
  0x20   :  { %542 = vmatprep.subr.bf16.mxu1 %v682_v0 }
  0x21   :  { %559 = vmatpush3.bf16.msra.mxu0 %v612_v17  ;;  %p660_p11 = por %p659_p10, %p658_p9 }
  0x22   :  { %560 = vmatprep.subr.bf16.mxu0 %v682_v0 }
  0x23   :  { %543 = vmatpush3.bf16.msra.mxu1 %v606_v11  ;;  %p661_p12 = pnand %p660_p11, %p654_p8 }
  0x24   :  { %544 = vmatprep.subr.bf16.mxu1 %v682_v0 }
  0x25   :  { %561 = vmatpush3.bf16.msra.mxu0 %v613_v18 }
  0x26   :  { %562 = vmatprep.subr.bf16.mxu0 %v682_v0 }
  0x27   :  { %545 = vmatpush3.bf16.msra.mxu1 %v607_v12 }
  0x28   :  { %546 = vmatprep.subr.bf16.mxu1 %v682_v0 }
  0x29   :  { %563 = vmatpush3.bf16.msra.mxu0 %v614_v26 }
  0x2a   :  { %564 = vmatprep.subr.bf16.mxu0 %v682_v0 }
  0x2b   :  { %547 = vmatpush3.bf16.msra.mxu1 %v608_v13 }
  0x2c   :  { %548 = vmatprep.subr.bf16.mxu1 %v682_v0 }
  0x2d   :  { %565 = vmatpush3.bf16.msra.mxu0 %v615_v27 }
  0x2e   :  { %566 = vmatprep.subr.bf16.mxu0 %v682_v0 }
  0x2f   :  { %549 = vmatpush3.bf16.msra.mxu1 %v609_v14 }
  0x30   :  { %550 = vmatprep.subr.bf16.mxu1 %v682_v0 }
  0x31   :  { %567 = vmatpush3.bf16.msra.mxu0 %v616_v28 }
  0x32   :  { %568 = vmatprep.subr.bf16.mxu0 %v682_v0 }
  0x33   :  { %551 = vmatpush3.bf16.msra.mxu1 %v610_v15 }
  0x34   :  { %576 = vmatprep.subr.bf16.mxu1 %v682_v0 }
  0x35   :  { %569 = vmatpush3.bf16.msra.mxu0 %v617_v29 }
  0x36   :  { %570 = vmatprep.subr.bf16.mxu0 %v682_v0 }
  0x39   :  { %571 = vmatpush3.bf16.msra.mxu0 %v618_v30 }
  0xee   :  { %v103_v20 = vpop.f32.mrb[0].mxu0 }
  0xef   :  { %v104_v21 = vadd.f32 %v472_v19, %v103_v20  ;;  %v534_v22 = vpop.f32.mrb[1].mxu0 }
  0xf0   :  { %v106_v23 = vpop.f32.mrb[2].mxu0 }
  0xf1   :  { %v109_v24 = vpack.c.bf16 %v104_v21, %v104_v21  ;;  %v535_v25 = vpop.f32.mrb[3].mxu0 }
  0xf3   :  { %553 = vmatmul.mubr.bf16.vlgmr.msra.gmra.mrb[0].mxu1 %v109_v24 }
  0xf4   :  { %592 = vmatprep.mubr.msk.bf16.mxu1 %vm684_vm2, %v682_v0  ;;  %577 = vmatpush3.bf16.msra.mxu1 %v619_v31 }
  0xf5   :  { %578 = vmatprep.subr.bf16.mxu1 %v682_v0 }
  0xf8   :  { %579 = vmatpush3.bf16.msra.mxu1 %v620_v32 }
  0xf9   :  { %580 = vmatprep.subr.bf16.mxu1 %v682_v0 }
  0xfc   :  { %581 = vmatpush3.bf16.msra.mxu1 %v621_v33 }
  0xfd   :  { %582 = vmatprep.subr.bf16.mxu1 %v682_v0 }
 0x100   :  { %583 = vmatpush3.bf16.msra.mxu1 %v622_v46 }
 0x101   :  { %584 = vmatprep.subr.bf16.mxu1 %v682_v0 }
 0x104   :  { %585 = vmatpush3.bf16.msra.mxu1 %v623_v47 }
 0x105   :  { %586 = vmatprep.subr.bf16.mxu1 %v682_v0 }
 0x108   :  { %587 = vmatpush3.bf16.msra.mxu1 %v624_v48 }
 0x109   :  { %588 = vmatprep.subr.bf16.mxu1 %v682_v0 }
 0x10c   :  { %589 = vmatpush3.bf16.msra.mxu1 %v625_v49 }
 0x10d   :  { %590 = vmatprep.subr.bf16.mxu1 %v682_v0 }
 0x110   :  { %591 = vmatpush3.bf16.msra.mxu1 %v626_v50 }
 0x1c6   :  { %v215_v35 = vpop.f32.mrb[0].mxu1 }
 0x1c7   :  { %v216_v36 = vadd.f32 %v474_v34, %v215_v35  ;;  %v554_v37 = vpop.f32.mrb[1].mxu1 }
 0x1c8   :  { %v218_v38 = vpop.f32.mrb[2].mxu1 }
 0x1c9   :  { %v222_v39 = vmul.f32 0.70710677, %v216_v36  ;;  %v555_v40 = vpop.f32.mrb[3].mxu1  ;;  %v221_v42 = vmul.f32 0.5, %v216_v36 }
 0x1cb   :  { %627 = verf.f32 %v222_v39 }
 0x1d5   :  { %v628_v41 = vpop.eup %627 }
 0x1d6   :  { %v224_v43 = vadd.f32 1.0, %v628_v41 }
 0x1d8   :  { %v225_v44 = vmul.f32 %v224_v43, %v221_v42 }
 0x1da   :  { %v226_v45 = vpack.c.bf16 %v225_v44, %v225_v44 }
 0x1dc   :  { %573 = vmatmul.mubr.bf16.vlgmr.msra.gmra.mrb[4].mxu0 %v226_v45 }
 0x2af   :  { %v332_v52 = vpop.f32.mrb[4].mxu0 }
 0x2b0   :  { %v333_v53 = vadd.f32 %v483_v51, %v332_v52  ;;  %v574_v54 = vpop.f32.mrb[5].mxu0 }
 0x2b1   :  { %v335_v55 = vpop.f32.mrb[6].mxu0 }
 0x2b2   :  { %v339_v56 = vmul.f32 0.70710677, %v333_v53  ;;  %v575_v57 = vpop.f32.mrb[7].mxu0  ;;  %v338_v59 = vmul.f32 0.5, %v333_v53 }
 0x2b4   :  { %629 = verf.f32 %v339_v56 }
 0x2be   :  { %v630_v58 = vpop.eup %629 }
 0x2bf   :  { %v341_v60 = vadd.f32 1.0, %v630_v58 }
 0x2c1   :  { %v342_v61 = vmul.f32 %v341_v60, %v338_v59 }
 0x2c3   :  { %v343_v62 = vpack.c.bf16 %v342_v61, %v342_v61 }
 0x2c5   :  { %593 = vmatmul.mubr.bf16.vlgmr.msra.gmra.mrb[4].mxu1 %v343_v62 }
 0x398   :  { %v449_v0 = vpop.f32.mrb[4].mxu1 }
 0x399   :  { %v450_v1 = vadd.f32 %v492_v63, %v449_v0  ;;  %v594_v2 = vpop.f32.mrb[5].mxu1 }
 0x39a   :  { %v452_v3 = vpop.f32.mrb[6].mxu1 }
 0x39b   :  { %v595_v4 = vpop.f32.mrb[7].mxu1  ;;  %456 = vst.msk [vmem:[#allocation5] sm:$0xff] %vm455_vm4, %v450_v1 }
 0x39c   :  { %664 = shalt.err (!%p661_p12)
}
 0x39d   :  { %s665_s8 = scalar_lea.hbm %s868_s9, 128 }
 0x39e   :  { %p666_p13 = scmp.ne.s32.totalorder %s868_s9, %s665_s8  ;;  %p669_p0 = scmp.lt.u32.totalorder %s665_s8, %s868_s9 }
 0x3a0   :  { %p671_p1 = pnand %p669_p0, %p666_p13 }
 0x3a2   :  { %674 = shalt.err (!%p671_p1)
}
 0x3a3   :  { %466 = dma.vmem_to_hbm [thread:$0]  %s464_s16, 128, %s868_s9, [#allocation4]  }
 0x3a4   :  { %677 = dma.done.wait [#allocation4], 128  }
 0x3a5   :  { %678 = vsyncadd [#allocation4], 4294967168 }
 0x3a6   :  { %470 = vsyncpa [#allocation3], 1 }
 0x3a7   :  { %471 = vsyncpa [#allocation4], 1 }

</bundles_post_ra>
